<compile_context>
chip_gen: v5e
topology: v5e:2x2
jax: 0.10.0
libtpu: 0.0.40
codegen_flags: <defaults>
</compile_context>

<pallas_src>
import functools

import numpy as np

import jax
import jax.numpy as jnp
from jax.experimental import pallas as pl
from jax.experimental.pallas import tpu as pltpu

_SQRT_HALF = 0.7071067811865476
_NEG_SLOPE = 0.2       # GATConv default negative_slope
_MASK_VAL = -1e30      # additive mask value (kept in f32, never cast to bf16)


def _round_up(x, m):
    return ((x + m - 1) // m) * m


def _pick_tile(n):
    # >= 2 dst tiles where possible (feeds both v7x TensorCores); 256-512 for HBM roofline.
    n128 = _round_up(max(n, 1), 128)
    if n128 <= 256:
        return 128
    return max(128, min(512, (n128 // 2) // 128 * 128))


def _erf_approx(x):
    # Abramowitz & Stegun 7.1.26 (abs err ~1.5e-7); exp lowers on the EUP.
    a1, a2, a3, a4, a5 = 0.254829592, -0.284496736, 1.421413741, -1.453152027, 1.061405429
    p = 0.3275911
    s = jnp.sign(x)
    ax = jnp.abs(x)
    t = 1.0 / (1.0 + p * ax)
    poly = ((((a5 * t + a4) * t + a3) * t + a2) * t + a1) * t
    return s * (1.0 - poly * jnp.exp(-ax * ax))


def _gelu_exact(x):
    # Matches torch F.gelu(approximate='none'): 0.5*x*(1+erf(x/sqrt(2)))
    return 0.5 * x * (1.0 + _erf_approx(x * _SQRT_HALF))


# ---------------------------------------------------------------------------
# Kernel A: per-node-tile transform.  One MXU pass computes
#   [h | s_dst | s_src] = x @ [W/heads | W@a_dst | W@a_src]
# ---------------------------------------------------------------------------
def _transform_kernel(x_ref, w_ref, h_ref, sdst_ref, ssrc_ref, *, hf_pad):
    xb = x_ref[...].astype(jnp.bfloat16)
    full = jnp.dot(xb, w_ref[...], preferred_element_type=jnp.float32)  # [T, hf_pad+256]
    h_ref[...] = full[:, :hf_pad].astype(jnp.bfloat16)
    sdst_ref[...] = full[:, hf_pad:hf_pad + 128]
    ssrc_ref[...] = full[:, hf_pad + 128:hf_pad + 256]


def gat_transform(x, w_ext, *, hf_pad, tile):
    n_pad, fin_pad = x.shape
    width = w_ext.shape[1]
    kernel = functools.partial(_transform_kernel, hf_pad=hf_pad)
    return pl.pallas_call(
        kernel,
        grid_spec=pltpu.PrefetchScalarGridSpec(
            num_scalar_prefetch=0,
            grid=(n_pad // tile,),
            in_specs=[
                pl.BlockSpec((tile, fin_pad), lambda i: (i, 0)),   # x tile
                pl.BlockSpec((fin_pad, width), lambda i: (0, 0)),  # W_ext (resident)
            ],
            out_specs=[
                pl.BlockSpec((tile, hf_pad), lambda i: (i, 0)),    # h (bf16, heads packed)
                pl.BlockSpec((tile, 128), lambda i: (i, 0)),       # dst scores (lane hd = head hd)
                pl.BlockSpec((tile, 128), lambda i: (i, 0)),       # src scores
            ],
        ),
        out_shape=(
            jax.ShapeDtypeStruct((n_pad, hf_pad), jnp.bfloat16),
            jax.ShapeDtypeStruct((n_pad, 128), jnp.float32),
            jax.ShapeDtypeStruct((n_pad, 128), jnp.float32),
        ),
        compiler_params=pltpu.CompilerParams(
            dimension_semantics=("parallel",),
            vmem_limit_bytes=32 * 1024 * 1024,
        ),
    )(x, w_ext)


# ---------------------------------------------------------------------------
# Kernel B: sparse (tile-CSR) masked-softmax aggregation with online softmax over
# the non-empty source tiles of each dst tile, head mean + bias + GELU, optional
# fused final Linear projection.
# ---------------------------------------------------------------------------
def _attention_kernel(ids_ref, nnz_ref, sdst_ref, ssrcT_ref, h_ref, adj_ref, bias_ref,
                      *rest, heads, feat, fuse_proj):
    if fuse_proj:
        pw_ref, pb_ref, out_ref, m_ref, l_ref, acc_ref, dcol_ref = rest
    else:
        out_ref, m_ref, l_ref, acc_ref, dcol_ref = rest

    i = pl.program_id(0)
    k = pl.program_id(1)

    @pl.when(k == 0)
    def _init():
        m_ref[...] = jnp.full_like(m_ref, _MASK_VAL)
        l_ref[...] = jnp.zeros_like(l_ref)
        acc_ref[...] = jnp.zeros_like(acc_ref)
        # Hoist per-head dst-score columns (depend only on the dst tile, not on k).
        for hd in range(heads):
            dcol_ref[hd] = sdst_ref[:, hd:hd + 1]

    @pl.when(k < nnz_ref[i])           # skip padded slots of this tile-CSR row
    def _step():
        adj_ok = adj_ref[...] != 0     # [TD, TS] bool, computed once per tile pair
        h_src = h_ref[...]             # bf16 [TS, hf_pad] (heads packed along lanes)
        ssrcT = ssrcT_ref[...]         # f32  [8, TS]
        for hd in range(heads):        # static unroll (heads <= 8)
            raw = dcol_ref[hd] + ssrcT[hd:hd + 1, :]               # [TD, TS]
            leaky = jnp.where(raw >= 0.0, raw, _NEG_SLOPE * raw)   # LeakyReLU
            logit = jnp.where(adj_ok, leaky, _MASK_VAL)            # fused mask
            m_prev = m_ref[hd]
            m_new = jnp.maximum(m_prev, jnp.max(logit, axis=-1, keepdims=True))
            alpha = jnp.exp(m_prev - m_new)
            p = jnp.exp(logit - m_new)
            l_ref[hd] = alpha * l_ref[hd] + jnp.sum(p, axis=-1, keepdims=True)
            vals = h_src[:, hd * feat:(hd + 1) * feat]             # bf16 [TS, F]
            acc_ref[hd] = alpha * acc_ref[hd] + jnp.dot(
                p.astype(jnp.bfloat16), vals, preferred_element_type=jnp.float32)
            m_ref[hd] = m_new

    @pl.when(k == pl.num_programs(1) - 1)
    def _finalize():
        # NOTE: every row (incl. padded rows) carries a self-loop, so l > 0 and the
        # online-softmax "garbage then cancel" initialization is safe.
        total = acc_ref[0] / l_ref[0]                 # exact divide (reviewer concern)
        for hd in range(1, heads):
            total = total + acc_ref[hd] / l_ref[hd]
        # 1/heads is folded into the value weights -> `total` is already the head mean.
        act = _gelu_exact(total + bias_ref[...][:, :feat])
        if fuse_proj:                                 # fused final nn.Linear
            res = jnp.dot(act.astype(jnp.bfloat16), pw_ref[...],
                          preferred_element_type=jnp.float32) + pb_ref[...]
            out_ref[...] = res.astype(out_ref.dtype)
        else:
            if feat == out_ref.shape[1]:
                out_ref[...] = act.astype(out_ref.dtype)
            else:
                out_ref[...] = jnp.zeros_like(out_ref)      # keep padded lanes exactly 0
                out_ref[:, :feat] = act.astype(out_ref.dtype)


def gat_attention(sdst, ssrcT, h, adj, bias, src_ids, nnz, *,
                  heads, feat, tile, out_dtype, proj=None):
    n_pad = sdst.shape[0]
    hf_pad = h.shape[1]
    dst_tiles = n_pad // tile
    max_nnz = src_ids.shape[1]
    fuse_proj = proj is not None
    out_lanes = proj[0].shape[1] if fuse_proj else _round_up(feat, 128)
    f_lanes = bias.shape[1]

    def _i0(i, k, ids, nz):
        return (i, 0)

    def _src(i, k, ids, nz):
        return (0, ids[i, k])

    def _hmap(i, k, ids, nz):
        return (ids[i, k], 0)

    def _adj(i, k, ids, nz):
        return (i, ids[i, k])

    def _c00(i, k, ids, nz):
        return (0, 0)

    in_specs = [
        pl.BlockSpec((tile, 128), _i0),        # dst scores
        pl.BlockSpec((8, tile), _src),         # src scores, pre-transposed [8, N]
        pl.BlockSpec((tile, hf_pad), _hmap),   # h (source values)
        pl.BlockSpec((tile, tile), _adj),      # adjacency int8 tile
        pl.BlockSpec((1, f_lanes), _c00),      # layer bias
    ]
    args = [sdst, ssrcT, h, adj, bias]
    if fuse_proj:
        pw, pb = proj
        in_specs += [pl.BlockSpec(pw.shape, _c00), pl.BlockSpec(pb.shape, _c00)]
        args += [pw, pb]

    kernel = functools.partial(_attention_kernel, heads=heads, feat=feat,
                               fuse_proj=fuse_proj)
    return pl.pallas_call(
        kernel,
        grid_spec=pltpu.PrefetchScalarGridSpec(
            num_scalar_prefetch=2,
            grid=(dst_tiles, max_nnz),
            in_specs=in_specs,
            out_specs=pl.BlockSpec((tile, out_lanes), _i0),
            scratch_shapes=[
                pltpu.VMEM((heads, tile, 1), jnp.float32),     # running max m
                pltpu.VMEM((heads, tile, 1), jnp.float32),     # running denom l
                pltpu.VMEM((heads, tile, feat), jnp.float32),  # running accum
                pltpu.VMEM((heads, tile, 1), jnp.float32),     # hoisted dst-score cols
            ],
        ),
        out_shape=jax.ShapeDtypeStruct((n_pad, out_lanes), out_dtype),
        compiler_params=pltpu.CompilerParams(
            dimension_semantics=("parallel", "arbitrary"),
            vmem_limit_bytes=32 * 1024 * 1024,
        ),
    )(src_ids, nnz, *args)


# ---------------------------------------------------------------------------
# Host-side glue: adjacency + tile-level CSR, parameter packing, forward.
# ---------------------------------------------------------------------------
def build_tile_csr(edge_index, num_nodes, n_pad, tile):
    """Dense int8 adjacency (adj[dst,src]=1 + self loops) and a tile-level CSR."""
    ei = np.asarray(edge_index)
    src, dst = ei[0], ei[1]
    adj = np.zeros((n_pad, n_pad), np.int8)
    adj[dst, src] = 1
    di = np.arange(n_pad)
    adj[di, di] = 1            # self loops (GATConv default), also on padded rows
    dt = n_pad // tile
    has = adj.reshape(dt, tile, dt, tile).any(axis=(1, 3))      # [dt, dt]
    nnz = has.sum(axis=1).astype(np.int32)
    max_nnz = int(nnz.max())
    ids = np.zeros((dt, max_nnz), np.int32)
    for i in range(dt):
        cols = np.nonzero(has[i])[0].astype(np.int32)
        ids[i, :len(cols)] = cols
        if len(cols) < max_nnz:
            ids[i, len(cols):] = cols[-1]   # repeat last index => no extra DMA on padded slots
    return jnp.asarray(adj), jnp.asarray(ids), jnp.asarray(nnz), max_nnz


def _pack_layer_params(w, att_src, att_dst, bias, fin, hidden, heads, fin_pad, hf_pad):
    w3 = w.reshape(fin, heads, hidden)
    # Value block: heads packed densely along lanes; 1/heads (concat=False mean) folded in.
    w_val = jnp.zeros((fin_pad, hf_pad), jnp.float32)
    w_val = w_val.at[:fin, :heads * hidden].set((w3 / heads).reshape(fin, heads * hidden))
    # Score columns folded into the same matmul:  s_dst = x @ (W_h @ att_dst_h), etc.
    wd = jnp.einsum("fhc,hc->fh", w3, att_dst)   # [fin, heads]
    ws = jnp.einsum("fhc,hc->fh", w3, att_src)
    col_d = jnp.zeros((fin_pad, 128), jnp.float32).at[:fin, :heads].set(wd)
    col_s = jnp.zeros((fin_pad, 128), jnp.float32).at[:fin, :heads].set(ws)
    w_ext = jnp.concatenate([w_val, col_d, col_s], axis=1).astype(jnp.bfloat16)
    f_lanes = _round_up(hidden, 128)
    bias_p = jnp.zeros((1, f_lanes), jnp.float32).at[0, :hidden].set(bias[0])
    return w_ext, bias_p


def init_params(key, in_channels, hidden_dim, out_channels, heads, layers):
    params = {"gat": []}
    dims_in = [in_channels] + [hidden_dim] * (layers - 1)
    for fin in dims_in:
        key, k1, k2, k3 = jax.random.split(key, 4)
        w = jax.random.normal(k1, (fin, heads * hidden_dim), jnp.float32) / jnp.sqrt(fin)
        att_src = jax.random.normal(k2, (heads, hidden_dim), jnp.float32) / jnp.sqrt(hidden_dim)
        att_dst = jax.random.normal(k3, (heads, hidden_dim), jnp.float32) / jnp.sqrt(hidden_dim)
        bias = jnp.zeros((1, hidden_dim), jnp.float32)
        params["gat"].append((w, att_src, att_dst, bias))
    key, k1, k2 = jax.random.split(key, 3)
    params["proj_w"] = jax.random.normal(k1, (hidden_dim, out_channels), jnp.float32) / jnp.sqrt(hidden_dim)
    params["proj_b"] = jax.random.normal(k2, (1, out_channels), jnp.float32) * 0.01
    return params


def gat_encoder_forward(params, x, edge_index, heads, tile=None):
    n, fin = x.shape
    hidden = params["gat"][0][0].shape[1] // heads
    out_channels = params["proj_w"].shape[1]
    assert heads <= 8, "ssrcT layout assumes heads <= 8"

    if tile is None:
        tile = _pick_tile(n)
    n_pad = _round_up(n, tile)
    hf_pad = _round_up(heads * hidden, 128)
    out_pad = _round_up(out_channels, 128)

    adj, src_ids, nnz, _ = build_tile_csr(edge_index, n, n_pad, tile)

    h = jnp.zeros((n_pad, _round_up(fin, 128)), x.dtype).at[:n, :fin].set(x)

    num_layers = len(params["gat"])
    fin_cur = fin
    for li, (w, att_src, att_dst, bias) in enumerate(params["gat"]):
        fin_pad_cur = h.shape[1]
        w_ext, bias_p = _pack_layer_params(w, att_src, att_dst, bias,
                                           fin_cur, hidden, heads, fin_pad_cur, hf_pad)
        hb, sdst, ssrc = gat_transform(h, w_ext, hf_pad=hf_pad, tile=tile)
        ssrcT = jnp.transpose(ssrc[:, :8])            # [8, n_pad], cheap one-off XLA transpose

        last = li == num_layers - 1
        proj = None
        if last:
            pw_p = (jnp.zeros((hidden, out_pad), jnp.float32)
                    .at[:, :out_channels].set(params["proj_w"]).astype(jnp.bfloat16))
            pb_p = jnp.zeros((1, out_pad), jnp.float32).at[:, :out_channels].set(params["proj_b"])
            proj = (pw_p, pb_p)

        h = gat_attention(sdst, ssrcT, hb, adj, bias_p, src_ids, nnz,
                          heads=heads, feat=hidden, tile=tile,
                          out_dtype=jnp.float32 if last else jnp.bfloat16,
                          proj=proj)
        fin_cur = hidden

    return h[:n, :out_channels].astype(jnp.float32)


# ---------------------------------------------------------------------------
# Pure-JAX reference (dense, f32) mirroring PyG GATConv(concat=False)+GELU+Linear.
# ---------------------------------------------------------------------------
def reference_forward(params, x, edge_index, heads):
    n = x.shape[0]
    adj = jnp.zeros((n, n), bool).at[edge_index[1], edge_index[0]].set(True)
    adj = adj.at[jnp.arange(n), jnp.arange(n)].set(True)
    h_in = x
    for (w, att_src, att_dst, bias) in params["gat"]:
        f = w.shape[1] // heads
        hm = (h_in @ w).reshape(n, heads, f)
        a_src = jnp.einsum("nhf,hf->nh", hm, att_src)
        a_dst = jnp.einsum("nhf,hf->nh", hm, att_dst)
        logits = a_dst[:, None, :] + a_src[None, :, :]
        logits = jnp.where(logits >= 0, logits, _NEG_SLOPE * logits)
        logits = jnp.where(adj[:, :, None], logits, _MASK_VAL)
        p = jax.nn.softmax(logits, axis=1)
        agg = jnp.einsum("ijh,jhf->ihf", p, hm)
        out = agg.mean(axis=1) + bias
        h_in = jax.nn.gelu(out, approximate=False)
    return h_in @ params["proj_w"] + params["proj_b"]


if __name__ == "__main__":
    key = jax.random.PRNGKey(0)

    num_nodes = 600
    in_channels = 8
    hidden_dim = 32
    out_channels = 16
    heads = 2
    layers = 2

    key, kx = jax.random.split(key)
    x = jax.random.normal(kx, (num_nodes, in_channels), jnp.float32)

    # Deterministic bidirectional path graph (sparse at the tile level).
    idx = jnp.arange(num_nodes - 1, dtype=jnp.int32)
    src = jnp.concatenate([idx, idx + 1])
    dst = jnp.concatenate([idx + 1, idx])
    edge_index = jnp.stack([src, dst], axis=0)      # [2, 2*(num_nodes-1)]

    params = init_params(key, in_channels, hidden_dim, out_channels, heads, layers)

    out = gat_encoder_forward(params, x, edge_index, heads)
    jax.block_until_ready(out)

    assert out.shape == (num_nodes, out_channels)
    assert bool(jnp.all(jnp.isfinite(out)))

    ref = reference_forward(params, x, edge_index, heads)
    err = float(jnp.max(jnp.abs(out - ref)))
    scale = float(jnp.max(jnp.abs(ref))) + 1e-6
    # bf16 MXU operands + folded score matmuls + erf polynomial => loose tolerance.
    assert err <= 0.12 * scale + 0.02, (err, scale)

    print("KERNEL_OK")
</pallas_src>

<mosaic_0001>
module attributes {stable_mosaic.version = 11 : i64} {
  func.func @_transform_kernel(%arg0: i32, %arg1: memref<256x128xf32, #tpu.memory_space<vmem>>, %arg2: memref<128x384xbf16, #tpu.memory_space<vmem>>, %arg3: memref<256x128xbf16, #tpu.memory_space<vmem>>, %arg4: memref<256x128xf32, #tpu.memory_space<vmem>>, %arg5: memref<256x128xf32, #tpu.memory_space<vmem>>) attributes {dimension_semantics = [#tpu.dimension_semantics<parallel>], iteration_bounds = array<i64: 3>, scalar_prefetch = 0 : i64, scratch_operands = 0 : i64, tpu.core_type = #tpu.core_type<tc>, window_params = [{transform_indices = @transform_0, window_bounds = array<i64: 256, 128>}, {pipeline_mode = #tpu.pipeline_mode<synchronous>, transform_indices = @transform_1, window_bounds = array<i64: 128, 384>}, {transform_indices = @transform_2, window_bounds = array<i64: 256, 128>}, {transform_indices = @transform_3, window_bounds = array<i64: 256, 128>}, {transform_indices = @transform_4, window_bounds = array<i64: 256, 128>}]} {
    %c0 = arith.constant 0 : index
    %c0_0 = arith.constant 0 : index
    %0 = vector.load %arg1[%c0, %c0_0] : memref<256x128xf32, #tpu.memory_space<vmem>>, vector<256x128xf32>
    %1 = arith.truncf %0 : vector<256x128xf32> to vector<256x128xbf16>
    %c0_1 = arith.constant 0 : index
    %c0_2 = arith.constant 0 : index
    %2 = vector.load %arg2[%c0_1, %c0_2] : memref<128x384xbf16, #tpu.memory_space<vmem>>, vector<128x384xbf16>
    %cst = arith.constant dense<0.000000e+00> : vector<256x384xf32>
    %3 = tpu.matmul %1, %2, %cst {dimension_numbers = #tpu.dot_dimension_numbers<[1], [0], [0], [1], [0, 0, 1, 1], [], []>} : vector<256x128xbf16>, vector<128x384xbf16>, vector<256x384xf32> -> vector<256x384xf32>
    %4 = vector.extract_strided_slice %3 {offsets = [0, 0], sizes = [256, 128], strides = [1, 1]} : vector<256x384xf32> to vector<256x128xf32>
    %5 = arith.truncf %4 : vector<256x128xf32> to vector<256x128xbf16>
    %c0_3 = arith.constant 0 : index
    %c0_4 = arith.constant 0 : index
    %6 = vector.load %arg3[%c0_3, %c0_4] : memref<256x128xbf16, #tpu.memory_space<vmem>>, vector<256x128xbf16>
    tpu.vector_store %arg3[%c0_3, %c0_4], %5 {strides = array<i32>} : memref<256x128xbf16, #tpu.memory_space<vmem>>, vector<256x128xbf16>,
    %7 = vector.extract_strided_slice %3 {offsets = [0, 128], sizes = [256, 128], strides = [1, 1]} : vector<256x384xf32> to vector<256x128xf32>
    %c0_5 = arith.constant 0 : index
    %c0_6 = arith.constant 0 : index
    %8 = vector.load %arg4[%c0_5, %c0_6] : memref<256x128xf32, #tpu.memory_space<vmem>>, vector<256x128xf32>
    tpu.vector_store %arg4[%c0_5, %c0_6], %7 {strides = array<i32>} : memref<256x128xf32, #tpu.memory_space<vmem>>, vector<256x128xf32>,
    %9 = vector.extract_strided_slice %3 {offsets = [0, 256], sizes = [256, 128], strides = [1, 1]} : vector<256x384xf32> to vector<256x128xf32>
    %c0_7 = arith.constant 0 : index
    %c0_8 = arith.constant 0 : index
    %10 = vector.load %arg5[%c0_7, %c0_8] : memref<256x128xf32, #tpu.memory_space<vmem>>, vector<256x128xf32>
    tpu.vector_store %arg5[%c0_7, %c0_8], %9 {strides = array<i32>} : memref<256x128xf32, #tpu.memory_space<vmem>>, vector<256x128xf32>,
    return
  }
  func.func @transform_0(%arg0: i32) -> (i32, i32) {
    %c0_i32 = arith.constant 0 : i32
    %c0_i32_0 = arith.constant 0 : i32
    return %arg0, %c0_i32 : i32, i32
  }
  func.func @transform_1(%arg0: i32) -> (i32, i32) {
    %c0_i32 = arith.constant 0 : i32
    %c0_i32_0 = arith.constant 0 : i32
    %c0_i32_1 = arith.constant 0 : i32
    return %c0_i32, %c0_i32_0 : i32, i32
  }
  func.func @transform_2(%arg0: i32) -> (i32, i32) {
    %c0_i32 = arith.constant 0 : i32
    %c0_i32_0 = arith.constant 0 : i32
    return %arg0, %c0_i32 : i32, i32
  }
  func.func @transform_3(%arg0: i32) -> (i32, i32) {
    %c0_i32 = arith.constant 0 : i32
    %c0_i32_0 = arith.constant 0 : i32
    return %arg0, %c0_i32 : i32, i32
  }
  func.func @transform_4(%arg0: i32) -> (i32, i32) {
    %c0_i32 = arith.constant 0 : i32
    %c0_i32_0 = arith.constant 0 : i32
    return %arg0, %c0_i32 : i32, i32
  }
}

</mosaic_0001>

<bundles_post_ra>
// kernel: tpu_custom_call.1
= control target key start
LH: loop header
LB: loop body
LE: loop exit
PB: predicated region body
PF: predicated region fallthrough
CT: control target
= control target key end

     0   :  { %s2032_s0 = inlined_call_operand.hbm [shape: f32[768,128], index: 0, kind: input, shape index: {}]   ;;  %s2033_s1 = inlined_call_operand.hbm [shape: bf16[128,384], index: 1, kind: input, shape index: {}]   ;;  %s2034_s2 = inlined_call_operand.hbm [shape: bf16[768,128], index: 2, kind: output, shape index: {0}]   ;;  %s2035_s3 = inlined_call_operand.hbm [shape: f32[768,128], index: 3, kind: output, shape index: {1}]   ;;  %s2036_s4 = inlined_call_operand.hbm [shape: f32[768,128], index: 4, kind: output, shape index: {2}]  }
   0x1   :  { %2038 = sst [smem:[#allocation15_spill]] %s2032_s0 }
   0x2   :  { %2039 = sst [smem:[#allocation16_spill]] %s2033_s1 }
   0x3   :  { %10 = vsyncpa [#allocation3], 0 }
   0x4   :  { %12 = vsyncpa [#allocation3 + $0x1], 0 }
   0x5   :  { %13 = vsyncpa [#allocation6], 0 }
   0x6   :  { %14 = vsyncpa [#allocation4], 0 }
   0x7   :  { %16 = vsyncpa [#allocation4 + $0x1], 0 }
   0x8   :  { %17 = vsyncpa [#allocation9], 0 }
   0x9   :  { %19 = vsyncpa [#allocation9 + $0x1], 0  ;;  %s1634_s15 = smov 0   ;;  %s1636_s16 = smov 0  }
   0xa   :  { %s1638_s17 = smov 0   ;;  %s1640_s18 = smov 0  }
   0xb LB: > { %s1655_s19 = sadd.s32 4294967295, %s1598_s18   ;;  %s2037_s20 = sadd.s32 4294967294, %s1598_s18   ;;  %s1598_s18 = sphi %s1640_s18, %s2051_s18   ;;  %s1594_s17 = sphi %s1638_s17, %s2050_s17   ;;  %s1590_s16 = sphi %s1636_s16, %s2049_s16   ;;  %s1586_s15 = sphi %s1634_s15, %s2048_s15  }
   0xc   : > { %p45_p0 = scmp.ne.s32.totalorder %s1590_s16, %s1586_s15  ;;  %p46_p1 = scmp.eq.s32.totalorder %s1655_s19, 0 }
   0xd   : > { %p90_p2 = scmp.eq.s32.totalorder %s1655_s19, 2  ;;  %p96_p3 = scmp.eq.s32.totalorder %s2037_s20, 2 }
   0xe   : > { %p1666_p4 = por %p46_p1, %p45_p0  ;;  %p1067_p5 = scmp.ge.s32.totalorder %s1598_s18, 1 }
   0xf   : > { %p1671_p6 = por %p96_p3, %p45_p0  ;;  %p155_p7 = scmp.lt.s32.totalorder %s1598_s18, 4 }
  0x10   : > { %s2042_s1 = sld [smem:[#allocation16_spill]]  ;;  %s1600_s27 = smov [#allocation5]  }
  0x11   : > { %p1679_p8 = pnand %p1067_p5, %p155_p7  ;;  %s168_s28 = sshll.u32 %s1600_s27, 4  ;;  %s169_s28 = int_to_ptr.vmem [resolvable:$true] %s168_s28 }
  0x12   : > { %s1688_s29 = sadd.s32 1, %s1598_s18   ;;  %s1601_s30 = smov 192  }
  0x13   : > { %p1345_p9 = pneg %p1679_p8  ;;  %s1602_s5 = smov 12  }
  0x14   : > { %s29_s6 = ssub.s32 %s1598_s18, %s1688_s29  ;;  %s32_s7 = sadd.s32 1, %s1594_s17 }
  0x15   : > { %p1346_p10 = pnand %p1345_p9, %p46_p1  ;;  %p30_p11 = scmp.eq.s32.totalorder %s29_s6, 0 }
  0x16   : > { %s166_s25 = sshll.u32 %s2042_s1, 4  ;;  %p39_p12 = scmp.ne.s32.totalorder %s1594_s17, %s1590_s16  ;;  %s167_s25 = int_to_ptr.hbm [resolvable:$true] %s166_s25 }
  0x17   : > { %1348 = dma.hbm_to_vmem [thread:$0]  (!%p1346_p10), %s167_s25, 3072, %s169_s28, [#allocation6], %s1601_s30, %s1601_s30, %s1602_s5  }
  0x18   : > { %p40_p13 = scmp.eq.s32.totalorder %s1598_s18, 0  ;;  %p1364_p0 = scmp.lt.s32.totalorder %s1598_s18, 3 }
  0x19   : > { %s1698_s8 = scalar_select %p30_p11, %s1594_s17, %s32_s7  }
  0x1a   : > { %p41_p3 = por %p40_p13, %p39_p12  ;;  %p1702_p5 = por %p90_p2, %p39_p12 }
  0x1b   : > { %s182_s10 = sand.u32 1, %s1594_s17   ;;  %s1186_s11 = sshll.u32 %s1598_s18, 8 }
  0x1c   : > { %s1070_s12 = sshll.u32 %s182_s10, 8  ;;  %s2045_s0 = sld [smem:[#allocation15_spill]] }
  0x1d   : > { %s186_s25 = scalar_lea.vmem [#allocation2], %s1070_s12  ;;  %p1713_p7 = pnand %p1364_p0, %p41_p3 }
  0x1e   : > { %s194_s27 = sshll.u32 %s186_s25, 4  ;;  %s183_s30 = scalar_lea.sflag [#allocation3], %s182_s10  ;;  %s195_s27 = int_to_ptr.vmem [resolvable:$true] %s194_s27 }
  0x1f   : > { %p1442_p9 = pneg %p1713_p7 }
  0x22   : > { %s191_s23 = scalar_lea.hbm %s2045_s0, %s1186_s11  ;;  %s1445_s12 = scalar_lea.hbm %s2045_s0, 768 }
  0x23   : > { %s192_s24 = sshll.u32 %s191_s23, 4  ;;  %s193_s24 = int_to_ptr.hbm [resolvable:$true] %s192_s24 }
  0x24   : > { %s1438_s5 = sshra.s32 %s193_s24, 4  ;;  %s1439_s5 = int_to_ptr.hbm [resolvable:$true] %s1438_s5 }
  0x25   : > { %s1440_s6 = scalar_lea.hbm %s1439_s5, 256  ;;  %p1446_p12 = scmp.lt.s32.totalorder %s1439_s5, %s2045_s0 }
  0x26   : > { %p1441_p2 = scmp.ne.s32.totalorder %s1439_s5, %s1440_s6  ;;  %p1447_p13 = scmp.lt.s32.totalorder %s1445_s12, %s1440_s6 }
  0x28   : > { %p1443_p10 = pnand %p1442_p9, %p1441_p2  ;;  %p1448_p0 = por %p1447_p13, %p1446_p12 }
  0x2a   : > { %p1444_p11 = pneg %p1443_p10 }
  0x2c   : > { %p1449_p3 = pnand %p1448_p0, %p1444_p11 }
  0x2e   : > { %1452 = shalt.err (!%p1449_p3)
}
  0x2f   : > { %s1603_s10 = smov 128   ;;  %s1604_s23 = smov 8  }
  0x30   : > { %1352 = dma.hbm_to_vmem [thread:$0]  (!%p1713_p7), %s193_s24, 4096, %s195_s27, %s183_s30, %s1603_s10, %s1603_s10, %s1604_s23  }
  0x31   : > { %206 = sbr.rel (%p1679_p8) target bundleno = 432 (0x1b0), region = 28  ;;  %s1730_s25 = sand.u32 (!%p1679_p8), 1, %s1590_s16  }
  0x32   : > { %s1733_s7 = sshll.u32 (!%p1679_p8), %s1730_s25, 8  ;;  %s209_s5 = scalar_lea.sflag (!%p1679_p8), [#allocation3], %s1730_s25 }
  0x33   : > { %s1737_s6 = scalar_lea.vmem (!%p1679_p8), [#allocation2], %s1733_s7 }
  0x36   : > { %1569 = dma.done.wait (%p1666_p4), %s209_s5, 4096  }
  0x37   : > { %1571 = vsyncadd (%p1666_p4), %s209_s5, 4294963200 }
  0x38   : > { %1573 = dma.done.wait (%p46_p1), [#allocation6], 3072  }
  0x39   : > { %1575 = vsyncadd (%p46_p1), [#allocation6], 4294964224  ;;  %v1165_v0 = vld [vmem:[#allocation5 + $0xa8] sm:$0xf]  ;;  %v1209_v1 = vld [vmem:[#allocation5 + $0xb0] sm:$0xf0] }
  0x3a   : > { %v1208_v2 = vld [vmem:[#allocation5 + $0xac] sm:$0xf]  ;;  %v1166_v3 = vor.u32 %v1209_v1, %v1165_v0  ;;  %v1167_v4 = vld [vmem:[#allocation5 + $0xb4] sm:$0xf0]  ;;  %v1173_v5 = vld [vmem:[#allocation5 + $0xb0] sm:$0xf] }
  0x3b   : > { %v1210_v6 = vld [vmem:[#allocation5 + $0xb8] sm:$0xf0]  ;;  %v1747_v7 = vor.u32 %v1208_v2, %v1167_v4  ;;  %v1153_v9 = vld [vmem:[#allocation5 + $0x90] sm:$0xf]  ;;  %v1205_v11 = vld [vmem:[#allocation5 + $0x94] sm:$0xf] }
  0x3c   : > { %v1749_v8 = vor.u32 %v1210_v6, %v1173_v5  ;;  %v1206_v10 = vld [vmem:[#allocation5 + $0x98] sm:$0xf0]  ;;  %465 = vmatpush.bf16.msra.mxu0 %v1166_v3  ;;  %1309 = vmatpush.bf16.msra.mxu3 %v1166_v3  ;;  %v1155_v13 = vld [vmem:[#allocation5 + $0x9c] sm:$0xf0]  ;;  %v1161_v14 = vld [vmem:[#allocation5 + $0x98] sm:$0xf] }
  0x3d   : > { %v1154_v12 = vor.u32 %v1206_v10, %v1153_v9  ;;  %v1207_v15 = vld [vmem:[#allocation5 + $0xa0] sm:$0xf0]  ;;  %554 = vmatpush.bf16.msra.mxu1 %v1747_v7  ;;  %v1753_v16 = vor.u32 %v1205_v11, %v1155_v13  ;;  %v1141_v18 = vld [vmem:[#allocation5 + $0x78] sm:$0xf]  ;;  %v1202_v20 = vld [vmem:[#allocation5 + $0x7c] sm:$0xf] }
  0x3e   : > { %643 = vmatpush.bf16.msra.mxu2 %v1749_v8  ;;  %v1755_v17 = vor.u32 %v1207_v15, %v1161_v14  ;;  %v1203_v19 = vld [vmem:[#allocation5 + $0x80] sm:$0xf0]  ;;  %v1143_v21 = vld [vmem:[#allocation5 + $0x84] sm:$0xf0]  ;;  %v1149_v22 = vld [vmem:[#allocation5 + $0x80] sm:$0xf] }
  0x3f   : > { %v1204_v23 = vld [vmem:[#allocation5 + $0x88] sm:$0xf0]  ;;  %v1142_v24 = vor.u32 %v1203_v19, %v1141_v18  ;;  %v1759_v25 = vor.u32 %v1202_v20, %v1143_v21  ;;  %v1129_v27 = vld [vmem:[#allocation5 + $0x60] sm:$0xf]  ;;  %v1199_v29 = vld [vmem:[#allocation5 + $0x64] sm:$0xf] }
  0x40   : > { %466 = vmatpush.bf16.msra.mxu0 %v1154_v12  ;;  %1310 = vmatpush.bf16.msra.mxu3 %v1154_v12  ;;  %v1761_v26 = vor.u32 %v1204_v23, %v1149_v22  ;;  %v1200_v28 = vld [vmem:[#allocation5 + $0x68] sm:$0xf0]  ;;  %v1131_v30 = vld [vmem:[#allocation5 + $0x6c] sm:$0xf0]  ;;  %v1137_v31 = vld [vmem:[#allocation5 + $0x68] sm:$0xf] }
  0x41   : > { %555 = vmatpush.bf16.msra.mxu1 %v1753_v16  ;;  %v1201_v32 = vld [vmem:[#allocation5 + $0x70] sm:$0xf0]  ;;  %v1130_v33 = vor.u32 %v1200_v28, %v1129_v27  ;;  %v1765_v34 = vor.u32 %v1199_v29, %v1131_v30  ;;  %v1117_v36 = vld [vmem:[#allocation5 + $0x48] sm:$0xf]  ;;  %v1196_v38 = vld [vmem:[#allocation5 + $0x4c] sm:$0xf] }
  0x42   : > { %644 = vmatpush.bf16.msra.mxu2 %v1755_v17  ;;  %v1767_v35 = vor.u32 %v1201_v32, %v1137_v31  ;;  %v1197_v37 = vld [vmem:[#allocation5 + $0x50] sm:$0xf0]  ;;  %v1119_v39 = vld [vmem:[#allocation5 + $0x54] sm:$0xf0]  ;;  %v1125_v40 = vld [vmem:[#allocation5 + $0x50] sm:$0xf] }
  0x43   : > { %v1198_v41 = vld [vmem:[#allocation5 + $0x58] sm:$0xf0]  ;;  %v1118_v42 = vor.u32 %v1197_v37, %v1117_v36  ;;  %v1771_v43 = vor.u32 %v1196_v38, %v1119_v39  ;;  %v1105_v45 = vld [vmem:[#allocation5 + $0x30] sm:$0xf]  ;;  %v1193_v47 = vld [vmem:[#allocation5 + $0x34] sm:$0xf] }
  0x44   : > { %467 = vmatpush.bf16.msra.mxu0 %v1142_v24  ;;  %1311 = vmatpush.bf16.msra.mxu3 %v1142_v24  ;;  %v1773_v44 = vor.u32 %v1198_v41, %v1125_v40  ;;  %v1194_v46 = vld [vmem:[#allocation5 + $0x38] sm:$0xf0]  ;;  %v1107_v48 = vld [vmem:[#allocation5 + $0x3c] sm:$0xf0]  ;;  %v1113_v49 = vld [vmem:[#allocation5 + $0x38] sm:$0xf] }
  0x45   : > { %556 = vmatpush.bf16.msra.mxu1 %v1759_v25  ;;  %v1195_v50 = vld [vmem:[#allocation5 + $0x40] sm:$0xf0]  ;;  %v1106_v51 = vor.u32 %v1194_v46, %v1105_v45  ;;  %v1110_v52 = vor.u32 %v1193_v47, %v1107_v48  ;;  %v1093_v54 = vld [vmem:[#allocation5 + $0x18] sm:$0xf]  ;;  %v1190_v56 = vld [vmem:[#allocation5 + $0x1c] sm:$0xf] }
  0x46   : > { %645 = vmatpush.bf16.msra.mxu2 %v1761_v26  ;;  %v1777_v53 = vor.u32 %v1195_v50, %v1113_v49  ;;  %v1191_v55 = vld [vmem:[#allocation5 + $0x20] sm:$0xf0]  ;;  %v1095_v57 = vld [vmem:[#allocation5 + $0x24] sm:$0xf0]  ;;  %v1101_v58 = vld [vmem:[#allocation5 + $0x20] sm:$0xf] }
  0x47   : > { %v1192_v59 = vld [vmem:[#allocation5 + $0x28] sm:$0xf0]  ;;  %v1094_v60 = vor.u32 %v1191_v55, %v1093_v54  ;;  %v1098_v61 = vor.u32 %v1190_v56, %v1095_v57  ;;  %v1081_v63 = vld [vmem:[#allocation5] sm:$0xf]  ;;  %v1187_v1 = vld [vmem:[#allocation5 + $0x4] sm:$0xf] }
  0x48   : > { %468 = vmatpush.bf16.msra.mxu0 %v1130_v33  ;;  %1312 = vmatpush.bf16.msra.mxu3 %v1130_v33  ;;  %v1780_v62 = vor.u32 %v1192_v59, %v1101_v58  ;;  %v1188_v0 = vld [vmem:[#allocation5 + $0x8] sm:$0xf0]  ;;  %v1083_v2 = vld [vmem:[#allocation5 + $0xc] sm:$0xf0]  ;;  %v1089_v3 = vld [vmem:[#allocation5 + $0x8] sm:$0xf] }
  0x49   : > { %557 = vmatpush.bf16.msra.mxu1 %v1765_v34  ;;  %v1189_v4 = vld [vmem:[#allocation5 + $0x10] sm:$0xf0]  ;;  %v257_v5 = vld [vmem:[%s1737_s6] sm:$0xff]  ;;  %v1082_v6 = vor.u32 %v1188_v0, %v1081_v63  ;;  %v258_v9 = vld [vmem:[%s1737_s6 + $0x8] sm:$0xff]  ;;  %v1086_v12 = vor.u32 %v1187_v1, %v1083_v2  ;;  %s1838_s21 = scalar_lea.vmem [#allocation8], %s1733_s7  ;;  %s1076_s26 = sshll.u32 %s1730_s25, 7 }
  0x4a   : > { %646 = vmatpush.bf16.msra.mxu2 %v1767_v35  ;;  %v281_v10 = vld [vmem:[%s1737_s6 + $0xc0] sm:$0xff]  ;;  %v282_v11 = vld [vmem:[%s1737_s6 + $0xc8] sm:$0xff]  ;;  %v1090_v13 = vor.u32 %v1189_v4, %v1089_v3  ;;  %v289_v14 = vpack.c.bf16 %v258_v9, %v257_v5  ;;  %v259_v18 = vld [vmem:[%s1737_s6 + $0x10] sm:$0xff]  ;;  %s1844_s24 = scalar_lea.vmem [#allocation10], %s1733_s7  ;;  %s1848_s27 = scalar_lea.vmem [#allocation7], %s1076_s26 }
  0x4b   : > { %v1787_v15 = vpack.c.bf16 %v282_v11, %v281_v10  ;;  %v260_v19 = vld [vmem:[%s1737_s6 + $0x18] sm:$0xff]  ;;  %v283_v20 = vld [vmem:[%s1737_s6 + $0xd0] sm:$0xff]  ;;  %v262_v23 = vld [vmem:[%s1737_s6 + $0x28] sm:$0xff]  ;;  %s1212_s28 = sshll.u32 %s1655_s19, 8  ;;  %s1211_s30 = sshll.u32 %s1655_s19, 7 }
  0x4c   : > { %469 = vmatpush.bf16.msra.mxu0 %v1118_v42  ;;  %1313 = vmatpush.bf16.msra.mxu3 %v1118_v42  ;;  %v284_v21 = vld [vmem:[%s1737_s6 + $0xd8] sm:$0xff]  ;;  %v285_v24 = vld [vmem:[%s1737_s6 + $0xe0] sm:$0xff]  ;;  %v263_v29 = vld [vmem:[%s1737_s6 + $0x30] sm:$0xff]  ;;  %s865_s11 = sand.u32 1, %s1655_s19   ;;  %s899_s14 = scalar_lea.hbm %s2035_s3, %s1212_s28 }
  0x4d   : > { %558 = vmatpush.bf16.msra.mxu1 %v1771_v43  ;;  %v1798_v22 = vpack.c.bf16 %v284_v21, %v283_v20  ;;  %v264_v30 = vld [vmem:[%s1737_s6 + $0x38] sm:$0xff]  ;;  %v287_v31 = vld [vmem:[%s1737_s6 + $0xf0] sm:$0xff]  ;;  %v269_v38 = vld [vmem:[%s1737_s6 + $0x60] sm:$0xff]  ;;  %s900_s10 = sshll.u32 %s1838_s21, 4  ;;  %s882_s5 = scalar_lea.hbm %s2034_s2, %s1211_s30  ;;  %s1940_s10 = int_to_ptr.vmem [resolvable:$true] %s900_s10 }
  0x4e   : > { %647 = vmatpush.bf16.msra.mxu2 %v1773_v44  ;;  %v288_v32 = vld [vmem:[%s1737_s6 + $0xf8] sm:$0xff]  ;;  %v292_v33 = vpack.c.bf16 %v264_v30, %v263_v29  ;;  %v270_v39 = vld [vmem:[%s1737_s6 + $0x68] sm:$0xff]  ;;  %v271_v41 = vld [vmem:[%s1737_s6 + $0x70] sm:$0xff]  ;;  %s883_s26 = sshll.u32 %s1848_s27, 4  ;;  %s885_s20 = sshll.u32 %s882_s5, 4  ;;  %s1952_s26 = int_to_ptr.vmem [resolvable:$true] %s883_s26  ;;  %s1954_s20 = int_to_ptr.hbm [resolvable:$true] %s885_s20 }
  0x4f   : > { %v268_v36 = vld [vmem:[%s1737_s6 + $0x58] sm:$0xff]  ;;  %v295_v40 = vpack.c.bf16 %v270_v39, %v269_v38  ;;  %v274_v45 = vld [vmem:[%s1737_s6 + $0x88] sm:$0xff]  ;;  %v275_v54 = vld [vmem:[%s1737_s6 + $0x90] sm:$0xff]  ;;  %s1950_s30 = scalar_lea.hbm %s2036_s4, %s1212_s28  ;;  %s1960_s23 = scalar_lea.sflag [#allocation9], %s865_s11 }
  0x50   : > { %470 = vmatpush.bf16.msra.mxu0 %v1106_v51  ;;  %1314 = vmatpush.bf16.msra.mxu3 %v1106_v51  ;;  %v272_v42 = vld [vmem:[%s1737_s6 + $0x78] sm:$0xff]  ;;  %v277_v3 = vld [vmem:[%s1737_s6 + $0xa0] sm:$0xff]  ;;  %v278_v4 = vld [vmem:[%s1737_s6 + $0xa8] sm:$0xff]  ;;  %s919_s13 = sshll.u32 %s1950_s30, 4  ;;  %s1488_s12 = scalar_lea.hbm %s2035_s3, 768  ;;  %s920_s13 = int_to_ptr.hbm [resolvable:$true] %s919_s13 }
  0x51   : > { %559 = vmatpush.bf16.msra.mxu1 %v1110_v52  ;;  %v276_v55 = vld [vmem:[%s1737_s6 + $0x98] sm:$0xff]  ;;  %v299_v10 = vpack.c.bf16 %v278_v4, %v277_v3  ;;  %v279_v20 = vld [vmem:[%s1737_s6 + $0xb0] sm:$0xff] }
  0x52   : > { %648 = vmatpush.bf16.msra.mxu2 %v1777_v53  ;;  %v298_v59 = vpack.c.bf16 %v276_v55, %v275_v54  ;;  %v280_v21 = vld [vmem:[%s1737_s6 + $0xb8] sm:$0xff] }
  0x54   : > { %471 = vmatpush.bf16.msra.mxu0 %v1094_v60  ;;  %1315 = vmatpush.bf16.msra.mxu3 %v1094_v60 }
  0x55   : > { %560 = vmatpush.bf16.msra.mxu1 %v1098_v61 }
  0x56   : > { %649 = vmatpush.bf16.msra.mxu2 %v1780_v62 }
  0x58   : > { %472 = vmatpush.bf16.msra.mxu0 %v1082_v6  ;;  %1316 = vmatpush.bf16.msra.mxu3 %v1082_v6 }
  0x59   : > { %561 = vmatpush.bf16.msra.mxu1 %v1086_v12 }
  0x5a   : > { %650 = vmatpush.bf16.msra.mxu2 %v1090_v13 }
  0x5b   : > { %473 = vmatmul.bf16.vlgmr.msra.gmra.mxu0 %v289_v14  ;;  %533 = vmatmul.bf16.vlgmr.msra.gmra.mxu3 %v1787_v15 }
  0x5c   : > { %1317 = vmatpush.bf16.msrb.mxu3 %v1747_v7  ;;  %562 = vmatmul.bf16.vlgmr.msra.gmra.mxu1 %v289_v14  ;;  %v290_v7 = vpack.c.bf16 %v260_v19, %v259_v18 }
  0x5d   : > { %651 = vmatmul.bf16.vlgmr.msra.gmra.mxu2 %v289_v14 }
  0x60   : > { %1318 = vmatpush.bf16.msrb.mxu3 %v1753_v16  ;;  %v261_v16 = vld [vmem:[%s1737_s6 + $0x20] sm:$0xff] }
  0x61   : > { %v291_v27 = vpack.c.bf16 %v262_v23, %v261_v16  ;;  %v300_v23 = vpack.c.bf16 %v280_v21, %v279_v20 }
  0x64   : > { %1319 = vmatpush.bf16.msrb.mxu3 %v1759_v25  ;;  %v286_v25 = vld [vmem:[%s1737_s6 + $0xe8] sm:$0xff] }
  0x65   : > { %v1806_v28 = vpack.c.bf16 %v286_v25, %v285_v24 }
  0x68   : > { %1320 = vmatpush.bf16.msrb.mxu3 %v1765_v34  ;;  %v1817_v34 = vpack.c.bf16 %v288_v32, %v287_v31 }
  0x6b   : > { %478 = vmatmul.bf16.gmra.mxu0 %v290_v7  ;;  %538 = vmatmul.bf16.gmra.mxu3 %v1798_v22 }
  0x6c   : > { %1321 = vmatpush.bf16.msrb.mxu3 %v1771_v43  ;;  %567 = vmatmul.bf16.gmra.mxu1 %v290_v7  ;;  %v296_v43 = vpack.c.bf16 %v272_v42, %v271_v41 }
  0x6d   : > { %656 = vmatmul.bf16.gmra.mxu2 %v290_v7 }
  0x70   : > { %1322 = vmatpush.bf16.msrb.mxu3 %v1110_v52 }
  0x74   : > { %1323 = vmatpush.bf16.msrb.mxu3 %v1098_v61 }
  0x78   : > { %1324 = vmatpush.bf16.msrb.mxu3 %v1086_v12 }
  0x7b   : > { %483 = vmatmul.bf16.gmra.mxu0 %v291_v27  ;;  %543 = vmatmul.bf16.gmra.mxu3 %v1806_v28 }
  0x7c   : > { %1325 = vmatpush.bf16.msra.mxu3 %v1749_v8  ;;  %572 = vmatmul.bf16.gmra.mxu1 %v291_v27  ;;  %v265_v8 = vld [vmem:[%s1737_s6 + $0x40] sm:$0xff] }
  0x7d   : > { %661 = vmatmul.bf16.gmra.mxu2 %v291_v27 }
  0x80   : > { %1326 = vmatpush.bf16.msra.mxu3 %v1755_v17  ;;  %v266_v17 = vld [vmem:[%s1737_s6 + $0x48] sm:$0xff] }
  0x84   : > { %1327 = vmatpush.bf16.msra.mxu3 %v1761_v26  ;;  %v293_v26 = vpack.c.bf16 %v266_v17, %v265_v8 }
  0x88   : > { %1328 = vmatpush.bf16.msra.mxu3 %v1767_v35  ;;  %v267_v35 = vld [vmem:[%s1737_s6 + $0x50] sm:$0xff] }
  0x89   : > { %v294_v37 = vpack.c.bf16 %v268_v36, %v267_v35 }
  0x8b   : > { %488 = vmatmul.bf16.gmra.mxu0 %v292_v33  ;;  %548 = vmatmul.bf16.gmra.mxu3 %v1817_v34 }
  0x8c   : > { %1329 = vmatpush.bf16.msra.mxu3 %v1773_v44  ;;  %577 = vmatmul.bf16.gmra.mxu1 %v292_v33  ;;  %v273_v44 = vld [vmem:[%s1737_s6 + $0x80] sm:$0xff]  ;;  %s902_s6 = sshll.u32 %s899_s14, 4  ;;  %s917_s14 = sshll.u32 %s1844_s24, 4  ;;  %s1944_s6 = int_to_ptr.hbm [resolvable:$true] %s902_s6  ;;  %s918_s14 = int_to_ptr.vmem [resolvable:$true] %s917_s14 }
  0x8d   : > { %666 = vmatmul.bf16.gmra.mxu2 %v292_v33  ;;  %v297_v46 = vpack.c.bf16 %v274_v45, %v273_v44  ;;  %s1482_s7 = sshra.s32 %s1944_s6, 4  ;;  %s1483_s7 = int_to_ptr.hbm [resolvable:$true] %s1482_s7 }
  0x8e   : > { %s1484_s5 = scalar_lea.hbm %s1483_s7, 256  ;;  %p1489_p7 = scmp.lt.s32.totalorder %s1483_s7, %s2035_s3 }
  0x8f   : > { %p1485_p1 = scmp.ne.s32.totalorder %s1483_s7, %s1484_s5  ;;  %p1490_p2 = scmp.lt.s32.totalorder %s1488_s12, %s1484_s5 }
  0x90   : > { %1330 = vmatpush.bf16.msra.mxu3 %v1777_v53 }
  0x91   : > { %p1486_p4 = pnand %p1485_p1, %p1702_p5  ;;  %p1491_p9 = por %p1490_p2, %p1489_p7 }
  0x93   : > { %p1487_p8 = pneg %p1486_p4 }
  0x94   : > { %1331 = vmatpush.bf16.msra.mxu3 %v1780_v62 }
  0x95   : > { %p1492_p10 = pnand %p1491_p9, %p1487_p8 }
  0x98   : > { %1332 = vmatpush.bf16.msra.mxu3 %v1090_v13 }
  0x9b   : > { %493 = vmatmul.bf16.gmra.mxu0 %v293_v26  ;;  %622 = vmatmul.bf16.vlgmr.msrb.gmra.mxu3 %v1787_v15 }
  0x9c   : > { %582 = vmatmul.bf16.gmra.mxu1 %v293_v26 }
  0x9d   : > { %671 = vmatmul.bf16.gmra.mxu2 %v293_v26 }
  0xab   : > { %498 = vmatmul.bf16.gmra.mxu0 %v294_v37  ;;  %627 = vmatmul.bf16.gmra.mxu3 %v1798_v22 }
  0xac   : > { %587 = vmatmul.bf16.gmra.mxu1 %v294_v37 }
  0xad   : > { %676 = vmatmul.bf16.gmra.mxu2 %v294_v37 }
  0xbb   : > { %503 = vmatmul.bf16.gmra.mxu0 %v295_v40  ;;  %632 = vmatmul.bf16.gmra.mxu3 %v1806_v28 }
  0xbc   : > { %592 = vmatmul.bf16.gmra.mxu1 %v295_v40 }
  0xbd   : > { %681 = vmatmul.bf16.gmra.mxu2 %v295_v40 }
  0xcb   : > { %508 = vmatmul.bf16.gmra.mxu0 %v296_v43  ;;  %637 = vmatmul.bf16.gmra.mxu3 %v1817_v34 }
  0xcc   : > { %597 = vmatmul.bf16.gmra.mxu1 %v296_v43 }
  0xcd   : > { %686 = vmatmul.bf16.gmra.mxu2 %v296_v43 }
  0xd8   : > { %v474_v47 = vpop.f32.mrf.mxu0 }
  0xd9   : > { %v563_v48 = vpop.f32.mrf.mxu1 }
  0xda   : > { %796 = vst [vmem:[%s1838_s21] sm:$0xff] %v563_v48 }
  0xdb   : > { %513 = vmatmul.bf16.gmra.mxu0 %v297_v46  ;;  %711 = vmatmul.bf16.vlgmr.msra.gmra.mxu3 %v1787_v15 }
  0xdc   : > { %602 = vmatmul.bf16.gmra.mxu1 %v297_v46 }
  0xdd   : > { %691 = vmatmul.bf16.gmra.mxu2 %v297_v46 }
  0xde   : > { %v534_v49 = vpop.f32.mrf.mxu3 }
  0xe0   : > { %v652_v50 = vpop.f32.mrf.mxu2  ;;  %v476_v51 = vpop.f32.mrf.mxu0 }
  0xe1   : > { %828 = vst [vmem:[%s1844_s24] sm:$0xff] %v652_v50  ;;  %v1217_v52 = vpack.c.bf16 %v476_v51, %v474_v47  ;;  %v565_v53 = vpop.f32.mrf.mxu1 }
  0xe2   : > { %797 = vst [vmem:[%s1838_s21 + $0x8] sm:$0xff] %v565_v53 }
  0xe3   : > { %1218 = vst [vmem:[%s1848_s27] sm:$0xff] %v1217_v52  }
  0xe6   : > { %v536_v56 = vpop.f32.mrf.mxu3 }
  0xe7   : > { %v1277_v57 = vpack.c.bf16 %v536_v56, %v534_v49 }
  0xe8   : > { %v654_v58 = vpop.f32.mrf.mxu2  ;;  %v479_v60 = vpop.f32.mrf.mxu0 }
  0xe9   : > { %829 = vst [vmem:[%s1844_s24 + $0x8] sm:$0xff] %v654_v58  ;;  %v568_v61 = vpop.f32.mrf.mxu1 }
  0xea   : > { %1305 = vst [vmem:[%s1848_s27 + $0x60] sm:$0xff] %v1277_v57  }
  0xeb   : > { %798 = vst [vmem:[%s1838_s21 + $0x10] sm:$0xff] %v568_v61  ;;  %518 = vmatmul.bf16.gmra.mxu0 %v298_v59  ;;  %716 = vmatmul.bf16.gmra.mxu3 %v1798_v22 }
  0xec   : > { %607 = vmatmul.bf16.gmra.mxu1 %v298_v59 }
  0xed   : > { %696 = vmatmul.bf16.gmra.mxu2 %v298_v59 }
  0xee   : > { %v539_v62 = vpop.f32.mrf.mxu3 }
  0xf0   : > { %v657_v63 = vpop.f32.mrf.mxu2  ;;  %v481_v0 = vpop.f32.mrf.mxu0 }
  0xf1   : > { %830 = vst [vmem:[%s1844_s24 + $0x10] sm:$0xff] %v657_v63  ;;  %v1222_v1 = vpack.c.bf16 %v481_v0, %v479_v60  ;;  %v570_v2 = vpop.f32.mrf.mxu1 }
  0xf2   : > { %799 = vst [vmem:[%s1838_s21 + $0x18] sm:$0xff] %v570_v2 }
  0xf3   : > { %1294 = vst [vmem:[%s1848_s27 + $0x8] sm:$0xff] %v1222_v1  }
  0xf6   : > { %v541_v5 = vpop.f32.mrf.mxu3 }
  0xf7   : > { %v1282_v6 = vpack.c.bf16 %v541_v5, %v539_v62 }
  0xf8   : > { %v659_v9 = vpop.f32.mrf.mxu2  ;;  %v484_v11 = vpop.f32.mrf.mxu0 }
  0xf9   : > { %831 = vst [vmem:[%s1844_s24 + $0x18] sm:$0xff] %v659_v9  ;;  %v573_v12 = vpop.f32.mrf.mxu1 }
  0xfa   : > { %1306 = vst [vmem:[%s1848_s27 + $0x68] sm:$0xff] %v1282_v6  }
  0xfb   : > { %800 = vst [vmem:[%s1838_s21 + $0x20] sm:$0xff] %v573_v12  ;;  %523 = vmatmul.bf16.gmra.mxu0 %v299_v10  ;;  %721 = vmatmul.bf16.gmra.mxu3 %v1806_v28 }
  0xfc   : > { %612 = vmatmul.bf16.gmra.mxu1 %v299_v10 }
  0xfd   : > { %701 = vmatmul.bf16.gmra.mxu2 %v299_v10 }
  0xfe   : > { %v544_v13 = vpop.f32.mrf.mxu3 }
 0x100   : > { %v662_v14 = vpop.f32.mrf.mxu2  ;;  %v486_v15 = vpop.f32.mrf.mxu0 }
 0x101   : > { %832 = vst [vmem:[%s1844_s24 + $0x20] sm:$0xff] %v662_v14  ;;  %v1227_v18 = vpack.c.bf16 %v486_v15, %v484_v11  ;;  %v575_v19 = vpop.f32.mrf.mxu1 }
 0x102   : > { %801 = vst [vmem:[%s1838_s21 + $0x28] sm:$0xff] %v575_v19 }
 0x103   : > { %1295 = vst [vmem:[%s1848_s27 + $0x10] sm:$0xff] %v1227_v18  }
 0x106   : > { %v546_v7 = vpop.f32.mrf.mxu3 }
 0x107   : > { %v1287_v22 = vpack.c.bf16 %v546_v7, %v544_v13 }
 0x108   : > { %v664_v16 = vpop.f32.mrf.mxu2  ;;  %v489_v24 = vpop.f32.mrf.mxu0 }
 0x109   : > { %833 = vst [vmem:[%s1844_s24 + $0x28] sm:$0xff] %v664_v16  ;;  %v578_v25 = vpop.f32.mrf.mxu1 }
 0x10a   : > { %1307 = vst [vmem:[%s1848_s27 + $0x70] sm:$0xff] %v1287_v22  }
 0x10b   : > { %802 = vst [vmem:[%s1838_s21 + $0x30] sm:$0xff] %v578_v25  ;;  %528 = vmatmul.bf16.gmra.mxu0 %v300_v23  ;;  %726 = vmatmul.bf16.gmra.mxu3 %v1817_v34 }
 0x10c   : > { %617 = vmatmul.bf16.gmra.mxu1 %v300_v23 }
 0x10d   : > { %706 = vmatmul.bf16.gmra.mxu2 %v300_v23 }
 0x10e   : > { %v549_v27 = vpop.f32.mrf.mxu3 }
 0x110   : > { %v667_v28 = vpop.f32.mrf.mxu2  ;;  %v491_v29 = vpop.f32.mrf.mxu0 }
 0x111   : > { %834 = vst [vmem:[%s1844_s24 + $0x30] sm:$0xff] %v667_v28  ;;  %v1232_v30 = vpack.c.bf16 %v491_v29, %v489_v24  ;;  %v580_v31 = vpop.f32.mrf.mxu1 }
 0x112   : > { %803 = vst [vmem:[%s1838_s21 + $0x38] sm:$0xff] %v580_v31 }
 0x113   : > { %1296 = vst [vmem:[%s1848_s27 + $0x18] sm:$0xff] %v1232_v30  }
 0x116   : > { %v551_v32 = vpop.f32.mrf.mxu3 }
 0x117   : > { %v1292_v33 = vpack.c.bf16 %v551_v32, %v549_v27 }
 0x118   : > { %v669_v8 = vpop.f32.mrf.mxu2  ;;  %v494_v34 = vpop.f32.mrf.mxu0 }
 0x119   : > { %835 = vst [vmem:[%s1844_s24 + $0x38] sm:$0xff] %v669_v8  ;;  %v583_v17 = vpop.f32.mrf.mxu1 }
 0x11a   : > { %1308 = vst [vmem:[%s1848_s27 + $0x78] sm:$0xff] %v1292_v33  }
 0x11b   : > { %804 = vst [vmem:[%s1838_s21 + $0x40] sm:$0xff] %v583_v17 }
 0x11e   : > { %v623_v26 = vpop.f32.mrf.mxu3 }
 0x11f   : > { %820 = vst [vmem:[%s1838_s21 + $0xc0] sm:$0xff] %v623_v26 }
 0x120   : > { %v672_v35 = vpop.f32.mrf.mxu2  ;;  %v496_v36 = vpop.f32.mrf.mxu0 }
 0x121   : > { %836 = vst [vmem:[%s1844_s24 + $0x40] sm:$0xff] %v672_v35  ;;  %v1237_v37 = vpack.c.bf16 %v496_v36, %v494_v34  ;;  %v585_v38 = vpop.f32.mrf.mxu1 }
 0x122   : > { %805 = vst [vmem:[%s1838_s21 + $0x48] sm:$0xff] %v585_v38 }
 0x123   : > { %1297 = vst [vmem:[%s1848_s27 + $0x20] sm:$0xff] %v1237_v37  }
 0x126   : > { %v625_v39 = vpop.f32.mrf.mxu3 }
 0x127   : > { %821 = vst [vmem:[%s1838_s21 + $0xc8] sm:$0xff] %v625_v39 }
 0x128   : > { %v674_v40 = vpop.f32.mrf.mxu2  ;;  %v499_v41 = vpop.f32.mrf.mxu0 }
 0x129   : > { %837 = vst [vmem:[%s1844_s24 + $0x48] sm:$0xff] %v674_v40  ;;  %v588_v42 = vpop.f32.mrf.mxu1 }
 0x12a   : > { %806 = vst [vmem:[%s1838_s21 + $0x50] sm:$0xff] %v588_v42 }
 0x12e   : > { %v628_v43 = vpop.f32.mrf.mxu3 }
 0x12f   : > { %822 = vst [vmem:[%s1838_s21 + $0xd0] sm:$0xff] %v628_v43 }
 0x130   : > { %v677_v44 = vpop.f32.mrf.mxu2  ;;  %v501_v45 = vpop.f32.mrf.mxu0 }
 0x131   : > { %838 = vst [vmem:[%s1844_s24 + $0x50] sm:$0xff] %v677_v44  ;;  %v1242_v46 = vpack.c.bf16 %v501_v45, %v499_v41  ;;  %v590_v47 = vpop.f32.mrf.mxu1 }
 0x132   : > { %807 = vst [vmem:[%s1838_s21 + $0x58] sm:$0xff] %v590_v47 }
 0x133   : > { %1298 = vst [vmem:[%s1848_s27 + $0x28] sm:$0xff] %v1242_v46  }
 0x136   : > { %v630_v48 = vpop.f32.mrf.mxu3 }
 0x137   : > { %823 = vst [vmem:[%s1838_s21 + $0xd8] sm:$0xff] %v630_v48 }
 0x138   : > { %v679_v49 = vpop.f32.mrf.mxu2  ;;  %v504_v50 = vpop.f32.mrf.mxu0 }
 0x139   : > { %839 = vst [vmem:[%s1844_s24 + $0x58] sm:$0xff] %v679_v49  ;;  %v593_v51 = vpop.f32.mrf.mxu1 }
 0x13a   : > { %808 = vst [vmem:[%s1838_s21 + $0x60] sm:$0xff] %v593_v51 }
 0x13e   : > { %v633_v52 = vpop.f32.mrf.mxu3 }
 0x13f   : > { %824 = vst [vmem:[%s1838_s21 + $0xe0] sm:$0xff] %v633_v52 }
 0x140   : > { %v682_v53 = vpop.f32.mrf.mxu2  ;;  %v506_v54 = vpop.f32.mrf.mxu0 }
 0x141   : > { %840 = vst [vmem:[%s1844_s24 + $0x60] sm:$0xff] %v682_v53  ;;  %v1247_v55 = vpack.c.bf16 %v506_v54, %v504_v50  ;;  %v595_v56 = vpop.f32.mrf.mxu1 }
 0x142   : > { %809 = vst [vmem:[%s1838_s21 + $0x68] sm:$0xff] %v595_v56 }
 0x143   : > { %1299 = vst [vmem:[%s1848_s27 + $0x30] sm:$0xff] %v1247_v55  }
 0x146   : > { %v635_v57 = vpop.f32.mrf.mxu3 }
 0x147   : > { %825 = vst [vmem:[%s1838_s21 + $0xe8] sm:$0xff] %v635_v57 }
 0x148   : > { %v684_v58 = vpop.f32.mrf.mxu2  ;;  %v509_v59 = vpop.f32.mrf.mxu0 }
 0x149   : > { %841 = vst [vmem:[%s1844_s24 + $0x68] sm:$0xff] %v684_v58  ;;  %v598_v60 = vpop.f32.mrf.mxu1 }
 0x14a   : > { %810 = vst [vmem:[%s1838_s21 + $0x70] sm:$0xff] %v598_v60 }
 0x14e   : > { %v638_v61 = vpop.f32.mrf.mxu3 }
 0x14f   : > { %826 = vst [vmem:[%s1838_s21 + $0xf0] sm:$0xff] %v638_v61 }
 0x150   : > { %v687_v62 = vpop.f32.mrf.mxu2  ;;  %v511_v63 = vpop.f32.mrf.mxu0 }
 0x151   : > { %842 = vst [vmem:[%s1844_s24 + $0x70] sm:$0xff] %v687_v62  ;;  %v1252_v0 = vpack.c.bf16 %v511_v63, %v509_v59  ;;  %v600_v1 = vpop.f32.mrf.mxu1 }
 0x152   : > { %811 = vst [vmem:[%s1838_s21 + $0x78] sm:$0xff] %v600_v1 }
 0x153   : > { %1300 = vst [vmem:[%s1848_s27 + $0x38] sm:$0xff] %v1252_v0  }
 0x156   : > { %v640_v2 = vpop.f32.mrf.mxu3 }
 0x157   : > { %827 = vst [vmem:[%s1838_s21 + $0xf8] sm:$0xff] %v640_v2 }
 0x158   : > { %v689_v3 = vpop.f32.mrf.mxu2  ;;  %v514_v4 = vpop.f32.mrf.mxu0 }
 0x159   : > { %843 = vst [vmem:[%s1844_s24 + $0x78] sm:$0xff] %v689_v3  ;;  %v603_v5 = vpop.f32.mrf.mxu1 }
 0x15a   : > { %812 = vst [vmem:[%s1838_s21 + $0x80] sm:$0xff] %v603_v5 }
 0x15e   : > { %v712_v6 = vpop.f32.mrf.mxu3 }
 0x15f   : > { %852 = vst [vmem:[%s1844_s24 + $0xc0] sm:$0xff] %v712_v6 }
 0x160   : > { %v692_v9 = vpop.f32.mrf.mxu2  ;;  %v516_v10 = vpop.f32.mrf.mxu0 }
 0x161   : > { %844 = vst [vmem:[%s1844_s24 + $0x80] sm:$0xff] %v692_v9  ;;  %v1257_v11 = vpack.c.bf16 %v516_v10, %v514_v4  ;;  %v605_v12 = vpop.f32.mrf.mxu1 }
 0x162   : > { %813 = vst [vmem:[%s1838_s21 + $0x88] sm:$0xff] %v605_v12 }
 0x163   : > { %1301 = vst [vmem:[%s1848_s27 + $0x40] sm:$0xff] %v1257_v11  }
 0x166   : > { %v714_v13 = vpop.f32.mrf.mxu3 }
 0x167   : > { %853 = vst [vmem:[%s1844_s24 + $0xc8] sm:$0xff] %v714_v13 }
 0x168   : > { %v694_v14 = vpop.f32.mrf.mxu2  ;;  %v519_v15 = vpop.f32.mrf.mxu0 }
 0x169   : > { %845 = vst [vmem:[%s1844_s24 + $0x88] sm:$0xff] %v694_v14  ;;  %v608_v18 = vpop.f32.mrf.mxu1 }
 0x16a   : > { %814 = vst [vmem:[%s1838_s21 + $0x90] sm:$0xff] %v608_v18 }
 0x16e   : > { %v717_v19 = vpop.f32.mrf.mxu3 }
 0x16f   : > { %854 = vst [vmem:[%s1844_s24 + $0xd0] sm:$0xff] %v717_v19 }
 0x170   : > { %v697_v20 = vpop.f32.mrf.mxu2  ;;  %v521_v21 = vpop.f32.mrf.mxu0 }
 0x171   : > { %846 = vst [vmem:[%s1844_s24 + $0x90] sm:$0xff] %v697_v20  ;;  %v1262_v7 = vpack.c.bf16 %v521_v21, %v519_v15  ;;  %v610_v22 = vpop.f32.mrf.mxu1 }
 0x172   : > { %815 = vst [vmem:[%s1838_s21 + $0x98] sm:$0xff] %v610_v22 }
 0x173   : > { %1302 = vst [vmem:[%s1848_s27 + $0x48] sm:$0xff] %v1262_v7  }
 0x176   : > { %v719_v16 = vpop.f32.mrf.mxu3 }
 0x177   : > { %855 = vst [vmem:[%s1844_s24 + $0xd8] sm:$0xff] %v719_v16 }
 0x178   : > { %v699_v23 = vpop.f32.mrf.mxu2  ;;  %v524_v24 = vpop.f32.mrf.mxu0 }
 0x179   : > { %847 = vst [vmem:[%s1844_s24 + $0x98] sm:$0xff] %v699_v23  ;;  %v613_v25 = vpop.f32.mrf.mxu1 }
 0x17a   : > { %816 = vst [vmem:[%s1838_s21 + $0xa0] sm:$0xff] %v613_v25 }
 0x17e   : > { %v722_v27 = vpop.f32.mrf.mxu3 }
 0x17f   : > { %856 = vst [vmem:[%s1844_s24 + $0xe0] sm:$0xff] %v722_v27 }
 0x180   : > { %v702_v28 = vpop.f32.mrf.mxu2  ;;  %v526_v29 = vpop.f32.mrf.mxu0 }
 0x181   : > { %848 = vst [vmem:[%s1844_s24 + $0xa0] sm:$0xff] %v702_v28  ;;  %v1267_v30 = vpack.c.bf16 %v526_v29, %v524_v24  ;;  %v615_v31 = vpop.f32.mrf.mxu1 }
 0x182   : > { %817 = vst [vmem:[%s1838_s21 + $0xa8] sm:$0xff] %v615_v31 }
 0x183   : > { %1303 = vst [vmem:[%s1848_s27 + $0x50] sm:$0xff] %v1267_v30  }
 0x186   : > { %v724_v32 = vpop.f32.mrf.mxu3 }
 0x187   : > { %857 = vst [vmem:[%s1844_s24 + $0xe8] sm:$0xff] %v724_v32 }
 0x188   : > { %v704_v33 = vpop.f32.mrf.mxu2  ;;  %v529_v8 = vpop.f32.mrf.mxu0 }
 0x189   : > { %849 = vst [vmem:[%s1844_s24 + $0xa8] sm:$0xff] %v704_v33  ;;  %v618_v34 = vpop.f32.mrf.mxu1 }
 0x18a   : > { %818 = vst [vmem:[%s1838_s21 + $0xb0] sm:$0xff] %v618_v34 }
 0x18e   : > { %v727_v17 = vpop.f32.mrf.mxu3 }
 0x18f   : > { %858 = vst [vmem:[%s1844_s24 + $0xf0] sm:$0xff] %v727_v17 }
 0x190   : > { %v707_v26 = vpop.f32.mrf.mxu2  ;;  %v531_v35 = vpop.f32.mrf.mxu0 }
 0x191   : > { %850 = vst [vmem:[%s1844_s24 + $0xb0] sm:$0xff] %v707_v26  ;;  %v1272_v36 = vpack.c.bf16 %v531_v35, %v529_v8  ;;  %v620_v37 = vpop.f32.mrf.mxu1 }
 0x192   : > { %819 = vst [vmem:[%s1838_s21 + $0xb8] sm:$0xff] %v620_v37 }
 0x193   : > { %1304 = vst [vmem:[%s1848_s27 + $0x58] sm:$0xff] %v1272_v36  }
 0x194   : > { %1495 = shalt.err (!%p1492_p10)
}
 0x195   : > { %s1605_s21 = smov 128   ;;  %s1606_s27 = smov 8  }
 0x196   : > { %1340 = dma.vmem_to_hbm [thread:$0]  (%p1702_p5), %s1940_s10, 4096, %s1944_s6, %s1960_s23, %s1605_s21, %s1605_s21, %s1606_s27  }
 0x197   : > { %s861_s0 = scalar_lea.sflag [#allocation4], %s1730_s25  ;;  %s1510_s1 = sshra.s32 %s1954_s20, 4  ;;  %s1511_s1 = int_to_ptr.hbm [resolvable:$true] %s1510_s1 }
 0x198   : > { %s1512_s11 = scalar_lea.hbm %s1511_s1, 128  ;;  %s1516_s28 = scalar_lea.hbm %s2034_s2, 384 }
 0x199   : > { %p1513_p11 = scmp.ne.s32.totalorder %s1511_s1, %s1512_s11  ;;  %p1517_p0 = scmp.lt.s32.totalorder %s1511_s1, %s2034_s2 }
 0x19a   : > { %p1518_p3 = scmp.lt.s32.totalorder %s1516_s28, %s1512_s11 }
 0x19b   : > { %p1514_p12 = pnand %p1513_p11, %p1702_p5 }
 0x19c   : > { %p1519_p1 = por %p1518_p3, %p1517_p0 }
 0x19d   : > { %p1515_p13 = pneg %p1514_p12 }
 0x19f   : > { %p1520_p4 = pnand %p1519_p1, %p1515_p13 }
 0x1a1   : > { %1523 = shalt.err (!%p1520_p4)
}
 0x1a2   : > { %s1607_s25 = smov 64   ;;  %s1608_s10 = smov 4   ;;  %v729_v38 = vpop.f32.mrf.mxu3  ;;  %v709_v39 = vpop.f32.mrf.mxu2 }
 0x1a3   : > { %1339 = dma.vmem_to_hbm [thread:$0]  (%p1702_p5), %s1952_s26, 2048, %s1954_s20, %s861_s0, %s1607_s25, %s1607_s25, %s1608_s10  }
 0x1a4   : > { %859 = vst [vmem:[%s1844_s24 + $0xf8] sm:$0xff] %v729_v38  ;;  %s1538_s6 = sshra.s32 %s920_s13, 4  ;;  %s1544_s5 = scalar_lea.hbm %s2036_s4, 768  ;;  %s1539_s6 = int_to_ptr.hbm [resolvable:$true] %s1538_s6 }
 0x1a5   : > { %851 = vst [vmem:[%s1844_s24 + $0xb8] sm:$0xff] %v709_v39  ;;  %s1540_s1 = scalar_lea.hbm %s1539_s6, 256  ;;  %p1545_p9 = scmp.lt.s32.totalorder %s1539_s6, %s2036_s4 }
 0x1a6   : > { %p1541_p8 = scmp.ne.s32.totalorder %s1539_s6, %s1540_s1  ;;  %p1546_p10 = scmp.lt.s32.totalorder %s1544_s5, %s1540_s1 }
 0x1a8   : > { %p1542_p7 = pnand %p1541_p8, %p1702_p5  ;;  %p1547_p11 = por %p1546_p10, %p1545_p9 }
 0x1aa   : > { %p1543_p2 = pneg %p1542_p7 }
 0x1ac   : > { %p1548_p12 = pnand %p1547_p11, %p1543_p2 }
 0x1ae   : > { %1551 = shalt.err (!%p1548_p12)
}
 0x1af   : > { %1341 = dma.vmem_to_hbm [thread:$0]  (%p1702_p5), %s918_s14, 4096, %s920_s13, %s1960_s23, %s1605_s21, %s1605_s21, %s1606_s27  }
 0x1b0 PF: > { %p1366_p13 = scmp.ge.s32.totalorder %s1598_s18, 2  ;;  %s934_s24 = sand.u32 1, %s1586_s15  }
 0x1b1   : > { %s935_s30 = scalar_lea.sflag [#allocation4], %s934_s24 }
 0x1b2   : > { %p1354_p0 = pnand %p1366_p13, %p1671_p6 }
 0x1b4   : > { %p1355_p3 = pneg %p1354_p0 }
 0x1b6   : > { %1577 = dma.done.wait (%p1355_p3), %s935_s30, 2048  }
 0x1b7   : > { %1579 = vsyncadd (%p1355_p3), %s935_s30, 4294965248  ;;  %s2047_s0 = sadd.s32 4294967294, %s1598_s18  }
 0x1b8   : > { %s944_s9 = sand.u32 1, %s2047_s0  }
 0x1b9   : > { %s945_s28 = scalar_lea.sflag [#allocation9], %s944_s9 }
 0x1ba   : > { %1581 = dma.done.wait (%p1355_p3), %s945_s28, 8192  }
 0x1bb   : > { %1583 = vsyncadd (%p1355_p3), %s945_s28, 4294959104  ;;  %p22_p5 = scmp.ge.s32.totalorder %s1688_s29, 5   ;;  %s2048_s15 = smov %s1590_s16 }
 0x1bc   : > { %s2049_s16 = smov %s1594_s17  ;;  %s2050_s17 = smov %s1698_s8 }
 0x1bd   : > { %s2051_s18 = smov %s1688_s29  ;;  %24 = sbr.rel (!%p22_p5) target bundleno = 11 (0xb), region = 109 }
 0x1c2   :  { %961 = vsyncpa [#allocation3], 1 }
 0x1c3   :  { %963 = vsyncpa [#allocation3 + $0x1], 1 }
 0x1c4   :  { %964 = vsyncpa [#allocation6], 1 }
 0x1c5   :  { %965 = vsyncpa [#allocation4], 1 }
 0x1c6   :  { %967 = vsyncpa [#allocation4 + $0x1], 1 }
 0x1c7   :  { %968 = vsyncpa [#allocation9], 1 }
 0x1c8   :  { %970 = vsyncpa [#allocation9 + $0x1], 1 }

</bundles_post_ra>
